<compile_context>
chip_gen: v7x
topology: tpu7x:2x2x1
jax: 0.10.0
libtpu: 0.0.40
codegen_flags: <defaults>
</compile_context>

<pallas_src>
import math
import functools

import jax
import jax.numpy as jnp
from jax.experimental import pallas as pl
from jax.experimental.pallas import tpu as pltpu


def _pick_tile(n, preferred):
    """Largest tile from a friendly set that divides n; else full extent (always legal)."""
    for t in (preferred, 256, 128, 64, 32, 16, 8):
        if t <= n and n % t == 0:
            return t
    return n


# --------------------------------------------------------------------------------------
# Stage 1: fused QKV projection + rotary embedding.
# Grid: (B, T//tr, 3*H).  Each step computes one (batch, row-tile, group) slice where
# group g = three*H + h.  Output layout: (B, 3*H, T, d), bf16.
# --------------------------------------------------------------------------------------
def _qkv_rope_kernel(x_ref, w_ref, b_ref, rot_ref, cos_ref, sin_ref, o_ref, *,
                     n_heads, sm_scale):
    g = pl.program_id(2)                                   # projection group (three-major)
    x = x_ref[0].astype(jnp.bfloat16)                      # (tr, D)
    y = jnp.dot(x, w_ref[0], preferred_element_type=jnp.float32) + b_ref[0]   # (tr, d) f32

    @pl.when(g < 2 * n_heads)        # q / k heads: apply RoPE (and fold 1/sqrt(d) into q)
    def _():
        # rotate_half(y) == y @ R  (R is a signed permutation) -> MXU, no lane relayout.
        y_rot = jnp.dot(y.astype(jnp.bfloat16), rot_ref[...],
                        preferred_element_type=jnp.float32)
        scale = jnp.where(g < n_heads, jnp.float32(sm_scale), jnp.float32(1.0))
        o_ref[0, 0] = ((y * cos_ref[...] + y_rot * sin_ref[...]) * scale).astype(o_ref.dtype)

    @pl.when(g >= 2 * n_heads)       # v heads: plain projection
    def _():
        o_ref[0, 0] = y.astype(o_ref.dtype)


# --------------------------------------------------------------------------------------
# Stage 2: flash-style causal attention with online softmax.
# Grid: (B, H, T//tq).  q tile (tq, d) vs. full-per-head K/V (T, d) resident in VMEM;
# inner fori_loop over KV tiles stops at the causal limit (qi + 1 tiles).
# --------------------------------------------------------------------------------------
def _flash_attn_kernel(q_ref, k_ref, v_ref, o_ref):
    qi = pl.program_id(2)
    tq = q_ref.shape[2]
    d = q_ref.shape[3]

    q = q_ref[0, 0]                                        # (tq, d) bf16, RoPE'd & pre-scaled
    neg_big = jnp.float32(-1e30)                           # finite mask value (NaN-safe)

    q_pos = qi * tq + jax.lax.broadcasted_iota(jnp.int32, (tq, tq), 0)

    def body(j, carry):
        m, l, acc = carry
        start = pl.multiple_of(j * tq, tq)
        k = k_ref[0, 0, pl.ds(start, tq), :]               # (tq, d) bf16
        v = v_ref[0, 0, pl.ds(start, tq), :]               # (tq, d) bf16
        s = jax.lax.dot_general(q, k, (((1,), (1,)), ((), ())),
                                preferred_element_type=jnp.float32)   # (tq, tq) f32
        k_pos = start + jax.lax.broadcasted_iota(jnp.int32, (tq, tq), 1)
        s = jnp.where(k_pos <= q_pos, s, neg_big)          # tile-local causal mask
        m_new = jnp.maximum(m, jnp.max(s, axis=-1, keepdims=True))
        alpha = jnp.exp(m - m_new)
        p = jnp.exp(s - m_new)
        l_new = alpha * l + jnp.sum(p, axis=-1, keepdims=True)
        acc_new = alpha * acc + jnp.dot(p.astype(jnp.bfloat16), v,
                                        preferred_element_type=jnp.float32)
        return m_new, l_new, acc_new

    m0 = jnp.full((tq, 1), neg_big, jnp.float32)
    l0 = jnp.zeros((tq, 1), jnp.float32)
    a0 = jnp.zeros((tq, d), jnp.float32)
    # Only KV tiles intersecting the lower-triangular region are visited.
    m, l, acc = jax.lax.fori_loop(0, qi + 1, body, (m0, l0, a0))

    o_ref[0, 0] = (acc * pl.reciprocal(l, approx=True)).astype(o_ref.dtype)


# --------------------------------------------------------------------------------------
# Stage 3: output projection, accumulated head-by-head through Wout.
# Grid: (B, T//tr, H) with the head axis last ("arbitrary" reduction).
# --------------------------------------------------------------------------------------
def _out_proj_kernel(a_ref, w_ref, b_ref, o_ref, acc_ref, *, n_heads):
    h = pl.program_id(2)

    @pl.when(h == 0)
    def _():
        acc_ref[...] = jnp.zeros_like(acc_ref)

    acc_ref[...] += jnp.dot(a_ref[0, 0], w_ref[0],
                            preferred_element_type=jnp.float32)

    @pl.when(h == n_heads - 1)
    def _():
        o_ref[0] = (acc_ref[...] + b_ref[...]).astype(o_ref.dtype)


# --------------------------------------------------------------------------------------
# Wrapper
# --------------------------------------------------------------------------------------
def mha_forward(x, rotary_emb, wqkv, bqkv, wout, bout, *, n_heads: int):
    B, T, D = x.shape
    H = n_heads
    d = D // H
    half = d // 2
    assert D % H == 0 and d % 2 == 0

    tr = _pick_tile(T, 256)    # row tile for the projections
    tq = _pick_tile(T, 128)    # q / kv tile for attention

    # Hoisted out of the kernels: cos/sin tables and the rotate_half matrix.
    cos = jnp.cos(rotary_emb).astype(jnp.float32)          # (T, d)
    sin = jnp.sin(rotary_emb).astype(jnp.float32)          # (T, d)
    eye = jnp.eye(half, dtype=jnp.float32)
    zero = jnp.zeros((half, half), jnp.float32)
    rot_mat = jnp.concatenate(                              # t @ rot_mat == rotate_half(t)
        [jnp.concatenate([zero, eye], axis=1),
         jnp.concatenate([-eye, zero], axis=1)], axis=0).astype(jnp.bfloat16)   # (d, d)

    # Reorganize weights so every grid step sees a lane-dense per-head slice (bf16 MXU operands).
    wqkv_r = wqkv.reshape(D, 3 * H, d).transpose(1, 0, 2).astype(jnp.bfloat16)   # (3H, D, d)
    bqkv_r = bqkv.reshape(3 * H, 1, d).astype(jnp.float32)                        # (3H, 1, d)
    wout_r = wout.reshape(H, d, D).astype(jnp.bfloat16)                           # (H, d, D)
    bout_r = bout.astype(jnp.float32)                                             # (1, D)

    sm_scale = 1.0 / math.sqrt(d)

    # ---- Stage 1: QKV projection + RoPE -> qkv (B, 3H, T, d) bf16 ----
    qkv = pl.pallas_call(
        functools.partial(_qkv_rope_kernel, n_heads=H, sm_scale=sm_scale),
        out_shape=jax.ShapeDtypeStruct((B, 3 * H, T, d), jnp.bfloat16),
        grid=(B, T // tr, 3 * H),
        in_specs=[
            pl.BlockSpec((1, tr, D), lambda b, r, g: (b, r, 0)),     # x
            pl.BlockSpec((1, D, d), lambda b, r, g: (g, 0, 0)),      # Wqkv (per group)
            pl.BlockSpec((1, 1, d), lambda b, r, g: (g, 0, 0)),      # b_qkv (per group)
            pl.BlockSpec((d, d), lambda b, r, g: (0, 0)),            # rotate_half matrix
            pl.BlockSpec((tr, d), lambda b, r, g: (r, 0)),           # cos
            pl.BlockSpec((tr, d), lambda b, r, g: (r, 0)),           # sin
        ],
        out_specs=pl.BlockSpec((1, 1, tr, d), lambda b, r, g: (b, g, r, 0)),
        compiler_params=pltpu.CompilerParams(
            dimension_semantics=("parallel", "parallel", "parallel")),
    )(x, wqkv_r, bqkv_r, rot_mat, cos, sin)

    # ---- Stage 2: flash attention -> (B, H, T, d) bf16 ----
    attn = pl.pallas_call(
        _flash_attn_kernel,
        out_shape=jax.ShapeDtypeStruct((B, H, T, d), jnp.bfloat16),
        grid=(B, H, T // tq),
        in_specs=[
            pl.BlockSpec((1, 1, tq, d), lambda b, h, qi: (b, h, qi, 0)),          # q tile
            pl.BlockSpec((1, 1, T, d), lambda b, h, qi: (b, H + h, 0, 0)),        # k (full seq)
            pl.BlockSpec((1, 1, T, d), lambda b, h, qi: (b, 2 * H + h, 0, 0)),    # v (full seq)
        ],
        out_specs=pl.BlockSpec((1, 1, tq, d), lambda b, h, qi: (b, h, qi, 0)),
        compiler_params=pltpu.CompilerParams(
            dimension_semantics=("parallel", "parallel", "parallel")),
    )(qkv, qkv, qkv)

    # ---- Stage 3: output projection (accumulate over heads) -> (B, T, D) ----
    out = pl.pallas_call(
        functools.partial(_out_proj_kernel, n_heads=H),
        out_shape=jax.ShapeDtypeStruct((B, T, D), x.dtype),
        grid=(B, T // tr, H),
        in_specs=[
            pl.BlockSpec((1, 1, tr, d), lambda b, r, h: (b, h, r, 0)),   # attn per head
            pl.BlockSpec((1, d, D), lambda b, r, h: (h, 0, 0)),          # Wout per head
            pl.BlockSpec((1, D), lambda b, r, h: (0, 0)),                # b_out
        ],
        out_specs=pl.BlockSpec((1, tr, D), lambda b, r, h: (b, r, 0)),
        scratch_shapes=[pltpu.VMEM((tr, D), jnp.float32)],
        compiler_params=pltpu.CompilerParams(
            dimension_semantics=("parallel", "parallel", "arbitrary")),
    )(attn, wout_r, bout_r)

    return out


def mha_reference(x, rotary_emb, wqkv, bqkv, wout, bout, *, n_heads: int):
    """Pure-JAX f32 reference matching the PyTorch module semantics (eval mode)."""
    B, T, D = x.shape
    hd = D // n_heads
    qkv = x @ wqkv + bqkv[0]
    q, k, v = jnp.split(qkv, 3, axis=-1)

    def split_heads(t):
        return t.reshape(B, T, n_heads, hd).transpose(0, 2, 1, 3)   # (B, h, T, d)

    q, k, v = map(split_heads, (q, k, v))
    cosp, sinp = jnp.cos(rotary_emb), jnp.sin(rotary_emb)

    def rope(t):
        t1, t2 = jnp.split(t, 2, axis=-1)
        return t * cosp + jnp.concatenate([-t2, t1], axis=-1) * sinp

    q, k = rope(q), rope(k)
    s = jnp.einsum('bhqd,bhkd->bhqk', q, k) / math.sqrt(hd)
    mask = jnp.tril(jnp.ones((T, T), dtype=bool))
    s = jnp.where(mask, s, -jnp.inf)
    p = jax.nn.softmax(s, axis=-1)
    o = jnp.einsum('bhqk,bhkd->bhqd', p, v)
    o = o.transpose(0, 2, 1, 3).reshape(B, T, D)
    return o @ wout + bout[0]


if __name__ == "__main__":
    B, T, d_model, n_heads = 2, 8, 32, 4
    head_dim = d_model // n_heads

    key = jax.random.PRNGKey(0)
    kx, kw1, kb1, kw2, kb2 = jax.random.split(key, 5)

    # nn.Linear-style uniform init
    bound = 1.0 / math.sqrt(d_model)
    wqkv = jax.random.uniform(kw1, (d_model, 3 * d_model), jnp.float32, -bound, bound)
    bqkv = jax.random.uniform(kb1, (1, 3 * d_model), jnp.float32, -bound, bound)
    wout = jax.random.uniform(kw2, (d_model, d_model), jnp.float32, -bound, bound)
    bout = jax.random.uniform(kb2, (1, d_model), jnp.float32, -bound, bound)

    x = jax.random.normal(kx, (B, T, d_model), jnp.float32)

    # rotary embedding table: (T, head_dim) = cat(freqs, freqs)
    inv_freq = 1.0 / (10000.0 ** (jnp.arange(0, head_dim, 2, dtype=jnp.float32) / head_dim))
    t_pos = jnp.arange(T, dtype=jnp.float32)
    freqs = jnp.einsum('t,f->tf', t_pos, inv_freq)            # (T, head_dim/2)
    rotary_emb = jnp.concatenate([freqs, freqs], axis=-1)      # (T, head_dim)

    out = mha_forward(x, rotary_emb, wqkv, bqkv, wout, bout, n_heads=n_heads)
    out = jax.block_until_ready(out)

    ref = mha_reference(x, rotary_emb, wqkv, bqkv, wout, bout, n_heads=n_heads)
    assert out.shape == (B, T, d_model)
    # bf16 MXU operands (f32 accumulation) => slightly looser tolerance than pure f32.
    assert jnp.allclose(out.astype(jnp.float32), ref, rtol=2e-2, atol=2e-2), "mismatch vs reference"

    print("KERNEL_OK")
</pallas_src>

<mosaic_0001>
module attributes {stable_mosaic.version = 11 : i64} {
  func.func @_qkv_rope_kernel(%arg0: i32, %arg1: i32, %arg2: i32, %arg3: memref<1x8x32xf32, #tpu.memory_space<vmem>>, %arg4: memref<1x32x8xbf16, #tpu.memory_space<vmem>>, %arg5: memref<1x1x8xf32, #tpu.memory_space<vmem>>, %arg6: memref<8x8xbf16, #tpu.memory_space<vmem>>, %arg7: memref<8x8xf32, #tpu.memory_space<vmem>>, %arg8: memref<8x8xf32, #tpu.memory_space<vmem>>, %arg9: memref<1x1x8x8xbf16, #tpu.memory_space<vmem>>) attributes {dimension_semantics = [#tpu.dimension_semantics<parallel>, #tpu.dimension_semantics<parallel>, #tpu.dimension_semantics<parallel>], iteration_bounds = array<i64: 2, 1, 12>, scalar_prefetch = 0 : i64, scratch_operands = 0 : i64, tpu.core_type = #tpu.core_type<tc>, window_params = [{transform_indices = @transform_0, window_bounds = array<i64: 1, 8, 32>}, {transform_indices = @transform_1, window_bounds = array<i64: 1, 32, 8>}, {transform_indices = @transform_2, window_bounds = array<i64: 1, 1, 8>}, {pipeline_mode = #tpu.pipeline_mode<synchronous>, transform_indices = @transform_3, window_bounds = array<i64: 8, 8>}, {transform_indices = @transform_4, window_bounds = array<i64: 8, 8>}, {transform_indices = @transform_5, window_bounds = array<i64: 8, 8>}, {transform_indices = @transform_6, window_bounds = array<i64: 1, 1, 8, 8>}]} {
    %c0 = arith.constant 0 : index
    %c0_0 = arith.constant 0 : index
    %c0_1 = arith.constant 0 : index
    %0 = vector.load %arg3[%c0, %c0_0, %c0_1] : memref<1x8x32xf32, #tpu.memory_space<vmem>>, vector<1x8x32xf32>
    %1 = vector.shape_cast %0 : vector<1x8x32xf32> to vector<8x32xf32>
    %2 = arith.truncf %1 : vector<8x32xf32> to vector<8x32xbf16>
    %c0_2 = arith.constant 0 : index
    %c0_3 = arith.constant 0 : index
    %c0_4 = arith.constant 0 : index
    %3 = vector.load %arg4[%c0_2, %c0_3, %c0_4] : memref<1x32x8xbf16, #tpu.memory_space<vmem>>, vector<1x32x8xbf16>
    %4 = vector.shape_cast %3 : vector<1x32x8xbf16> to vector<32x8xbf16>
    %cst = arith.constant dense<0.000000e+00> : vector<8x8xf32>
    %5 = tpu.matmul %2, %4, %cst {dimension_numbers = #tpu.dot_dimension_numbers<[1], [0], [0], [1], [0, 0, 1, 1], [], []>} : vector<8x32xbf16>, vector<32x8xbf16>, vector<8x8xf32> -> vector<8x8xf32>
    %c0_5 = arith.constant 0 : index
    %c0_6 = arith.constant 0 : index
    %c0_7 = arith.constant 0 : index
    %6 = vector.load %arg5[%c0_5, %c0_6, %c0_7] : memref<1x1x8xf32, #tpu.memory_space<vmem>>, vector<1x1x8xf32>
    %7 = vector.shape_cast %6 : vector<1x1x8xf32> to vector<1x8xf32>
    %8 = vector.broadcast %7 : vector<1x8xf32> to vector<8x8xf32>
    %9 = arith.addf %5, %8 : vector<8x8xf32>
    %c8_i32 = arith.constant 8 : i32
    %10 = arith.cmpi slt, %arg2, %c8_i32 : i32
    %11 = arith.extui %10 : i1 to i32
    %c0_i32 = arith.constant 0 : i32
    %12 = arith.cmpi ne, %11, %c0_i32 : i32
    scf.if %12 {
      %16 = arith.truncf %9 : vector<8x8xf32> to vector<8x8xbf16>
      %c0_10 = arith.constant 0 : index
      %c0_11 = arith.constant 0 : index
      %17 = vector.load %arg6[%c0_10, %c0_11] : memref<8x8xbf16, #tpu.memory_space<vmem>>, vector<8x8xbf16>
      %cst_12 = arith.constant dense<0.000000e+00> : vector<8x8xf32>
      %18 = tpu.matmul %16, %17, %cst_12 {dimension_numbers = #tpu.dot_dimension_numbers<[1], [0], [0], [1], [0, 0, 1, 1], [], []>} : vector<8x8xbf16>, vector<8x8xbf16>, vector<8x8xf32> -> vector<8x8xf32>
      %c4_i32 = arith.constant 4 : i32
      %19 = arith.cmpi slt, %arg2, %c4_i32 : i32
      %cst_13 = arith.constant 0.353553385 : f32
      %cst_14 = arith.constant 1.000000e+00 : f32
      %20 = arith.select %19, %cst_13, %cst_14 : f32
      %c0_15 = arith.constant 0 : index
      %c0_16 = arith.constant 0 : index
      %21 = vector.load %arg7[%c0_15, %c0_16] : memref<8x8xf32, #tpu.memory_space<vmem>>, vector<8x8xf32>
      %22 = arith.mulf %9, %21 : vector<8x8xf32>
      %c0_17 = arith.constant 0 : index
      %c0_18 = arith.constant 0 : index
      %23 = vector.load %arg8[%c0_17, %c0_18] : memref<8x8xf32, #tpu.memory_space<vmem>>, vector<8x8xf32>
      %24 = arith.mulf %18, %23 : vector<8x8xf32>
      %25 = arith.addf %22, %24 : vector<8x8xf32>
      %26 = vector.broadcast %20 : f32 to vector<8x8xf32>
      %27 = arith.mulf %25, %26 : vector<8x8xf32>
      %28 = arith.truncf %27 : vector<8x8xf32> to vector<8x8xbf16>
      %c0_19 = arith.constant 0 : index
      %c0_20 = arith.constant 0 : index
      %c0_21 = arith.constant 0 : index
      %c0_22 = arith.constant 0 : index
      %29 = vector.load %arg9[%c0_19, %c0_20, %c0_21, %c0_22] : memref<1x1x8x8xbf16, #tpu.memory_space<vmem>>, vector<1x1x8x8xbf16>
      %30 = vector.shape_cast %29 : vector<1x1x8x8xbf16> to vector<8x8xbf16>
      %31 = vector.shape_cast %28 : vector<8x8xbf16> to vector<1x1x8x8xbf16>
      tpu.vector_store %arg9[%c0_19, %c0_20, %c0_21, %c0_22], %31 {strides = array<i32>} : memref<1x1x8x8xbf16, #tpu.memory_space<vmem>>, vector<1x1x8x8xbf16>,
    } else {
    }
    %c8_i32_8 = arith.constant 8 : i32
    %13 = arith.cmpi sge, %arg2, %c8_i32_8 : i32
    %14 = arith.extui %13 : i1 to i32
    %c0_i32_9 = arith.constant 0 : i32
    %15 = arith.cmpi ne, %14, %c0_i32_9 : i32
    scf.if %15 {
      %16 = arith.truncf %9 : vector<8x8xf32> to vector<8x8xbf16>
      %c0_10 = arith.constant 0 : index
      %c0_11 = arith.constant 0 : index
      %c0_12 = arith.constant 0 : index
      %c0_13 = arith.constant 0 : index
      %17 = vector.load %arg9[%c0_10, %c0_11, %c0_12, %c0_13] : memref<1x1x8x8xbf16, #tpu.memory_space<vmem>>, vector<1x1x8x8xbf16>
      %18 = vector.shape_cast %17 : vector<1x1x8x8xbf16> to vector<8x8xbf16>
      %19 = vector.shape_cast %16 : vector<8x8xbf16> to vector<1x1x8x8xbf16>
      tpu.vector_store %arg9[%c0_10, %c0_11, %c0_12, %c0_13], %19 {strides = array<i32>} : memref<1x1x8x8xbf16, #tpu.memory_space<vmem>>, vector<1x1x8x8xbf16>,
    } else {
    }
    return
  }
  func.func @transform_0(%arg0: i32, %arg1: i32, %arg2: i32) -> (i32, i32, i32) {
    %c0_i32 = arith.constant 0 : i32
    %c0_i32_0 = arith.constant 0 : i32
    return %arg0, %arg1, %c0_i32 : i32, i32, i32
  }
  func.func @transform_1(%arg0: i32, %arg1: i32, %arg2: i32) -> (i32, i32, i32) {
    %c0_i32 = arith.constant 0 : i32
    %c0_i32_0 = arith.constant 0 : i32
    %c0_i32_1 = arith.constant 0 : i32
    return %arg2, %c0_i32, %c0_i32_0 : i32, i32, i32
  }
  func.func @transform_2(%arg0: i32, %arg1: i32, %arg2: i32) -> (i32, i32, i32) {
    %c0_i32 = arith.constant 0 : i32
    %c0_i32_0 = arith.constant 0 : i32
    %c0_i32_1 = arith.constant 0 : i32
    return %arg2, %c0_i32, %c0_i32_0 : i32, i32, i32
  }
  func.func @transform_3(%arg0: i32, %arg1: i32, %arg2: i32) -> (i32, i32) {
    %c0_i32 = arith.constant 0 : i32
    %c0_i32_0 = arith.constant 0 : i32
    %c0_i32_1 = arith.constant 0 : i32
    return %c0_i32, %c0_i32_0 : i32, i32
  }
  func.func @transform_4(%arg0: i32, %arg1: i32, %arg2: i32) -> (i32, i32) {
    %c0_i32 = arith.constant 0 : i32
    %c0_i32_0 = arith.constant 0 : i32
    return %arg1, %c0_i32 : i32, i32
  }
  func.func @transform_5(%arg0: i32, %arg1: i32, %arg2: i32) -> (i32, i32) {
    %c0_i32 = arith.constant 0 : i32
    %c0_i32_0 = arith.constant 0 : i32
    return %arg1, %c0_i32 : i32, i32
  }
  func.func @transform_6(%arg0: i32, %arg1: i32, %arg2: i32) -> (i32, i32, i32, i32) {
    %c0_i32 = arith.constant 0 : i32
    %c0_i32_0 = arith.constant 0 : i32
    return %arg0, %arg2, %arg1, %c0_i32 : i32, i32, i32, i32
  }
}

</mosaic_0001>

<bundles_post_ra>
// kernel: tpu_custom_call.1
= control target key start
LH: loop header
LB: loop body
LE: loop exit
PB: predicated region body
PF: predicated region fallthrough
CT: control target
= control target key end

     0   :  { %s820_s21 = smov 0   ;;  %s822_s22 = smov 0   ;;  %s897_s0 = inlined_call_operand.vmem [shape: f32[2,8,32], index: 0, kind: input, shape index: {}]   ;;  %s898_s1 = inlined_call_operand.vmem [shape: bf16[12,32,8], index: 1, kind: input, shape index: {}]   ;;  %s899_s2 = inlined_call_operand.vmem [shape: f32[12,1,8], index: 2, kind: input, shape index: {}]   ;;  %s900_s3 = inlined_call_operand.vmem [shape: bf16[8,8], index: 3, kind: input, shape index: {}]   ;;  %s901_s4 = inlined_call_operand.vmem [shape: f32[8,8], index: 4, kind: input, shape index: {}]   ;;  %s902_s5 = inlined_call_operand.vmem [shape: f32[8,8], index: 5, kind: input, shape index: {}]   ;;  %s903_s6 = inlined_call_operand.vmem [shape: bf16[2,12,8,8], index: 6, kind: output, shape index: {}]  }
   0x1   :  { %s824_s23 = smov 0   ;;  %s826_s24 = smov 0  }
   0x2   :  { %s828_s25 = smov 0  }
   0x3 LB: > { %s28_s26 = sadd.s32 1, %s771_s23  ;;  %s35_s27 = sadd.s32 1, %s775_s24  ;;  %s779_s25 = sphi %s828_s25, %s16_s25   ;;  %s775_s24 = sphi %s826_s24, %s907_s24   ;;  %s771_s23 = sphi %s824_s23, %s906_s23   ;;  %s767_s22 = sphi %s822_s22, %s905_s22   ;;  %s763_s21 = sphi %s820_s21, %s904_s21  }
   0x4   : > { %p29_p0 = scmp.ge.s32.totalorder %s28_s26, 12  ;;  %p660_p1 = scmp.ge.s32.totalorder %s779_s25, 1 }
   0x5   : > { %p275_p2 = scmp.lt.s32.totalorder %s779_s25, 25 }
   0x6   : > { %s909_s26 = smov (%p29_p0, %s28_s26), 0  ;;  %s911_s27 = smov (!%p29_p0, %s35_s27), %s775_s24 }
   0x7   : > { %p276_p3 = pnand %p660_p1, %p275_p2  ;;  %p37_p4 = scmp.ge.s32.totalorder %s911_s27, 2 }
   0x8   : > { %p336_p5 = scmp.lt.s32.totalorder (!%p276_p3), %s763_s21, 11  ;;  %p329_p6 = scmp.lt.s32.totalorder (!%p276_p3), %s767_s22, 1  ;;  %v781_v0 = vmov (!%p276_p3), 0.0   ;;  %vm782_vm0 = vmmov (!%p276_p3), 0   ;;  %vm389_vm1 = vcmask (!%p276_p3), 261120  }
   0x9   : > { %s913_s27 = smov (%p37_p4, %s911_s27), 0  ;;  %279 = sbr.rel (%p276_p3) target bundleno = 474 (0x1da), region = 44 }
   0xa   : > { %680 = vmatprep.subr.bf16.mxu0 (!%p276_p3), %v781_v0  ;;  %684 = vmatprep.mubr.msk.bf16.mxu0 (!%p276_p3), %vm782_vm0, %v781_v0  ;;  %p669_p7 = scmp.ge.s32.totalorder (!%p276_p3), %s763_s21, 8 }
  0x10   : > { %s337_s28 = scalar_select %p336_p5, %s763_s21, 11 }
  0x11   : > { %s915_s22 = smov (!%p329_p6, %s767_s22), 1  ;;  %v438_v11 = vld [vmem:[%s900_s3] sm:$0xf] (!%p669_p7)  ;;  %vm443_vm2 = vcmask (!%p669_p7), 1043456   ;;  %v783_v12 = vmov (!%p669_p7), 0.0   ;;  %vm784_vm3 = vmmov (!%p669_p7), 0  }
  0x12   : > { %s674_s29 = sshll.u32 %s337_s28, 4  ;;  %s661_s9 = sshll.u32 %s915_s22, 3  ;;  %v445_v13 = vsel (!%p669_p7), %vm443_vm2, %v438_v11, 0  ;;  %vm439_vm4 = vcmask (!%p669_p7), 64512   ;;  %v489_v15 = vld [vmem:[%s901_s4] sm:$0xff] (!%p669_p7)  ;;  %vm497_vm5 = vcmask (!%p669_p7), 60416  }
  0x13   : > { %s340_s8 = scalar_lea.vmem %s898_s1, %s674_s29  ;;  %s335_s12 = scalar_lea.vmem %s897_s0, %s661_s9  ;;  %v491_v16 = vld [vmem:[%s902_s5] sm:$0xff] (!%p669_p7) }
  0x14   : > { %v739_v1 = vld [vmem:[%s340_s8] sm:$0xff]   ;;  %s694_s13 = smul.u32 12, %s915_s22  ;;  %v740_v2 = vld [vmem:[%s340_s8 + $0x8] sm:$0xff]   ;;  %s343_s29 = scalar_lea.vmem %s899_s2, %s337_s28 }
  0x15   : > { %681 = vmatpush3.bf16.msra.mxu0 %v739_v1  ;;  %v364_v3 = vld [vmem:[%s335_s12] sm:$0xff]  ;;  %p487_p8 = scmp.lt.s32.totalorder (!%p669_p7), %s763_s21, 4 }
  0x16   : > { %s360_s14 = sadd.s32 %s694_s13, %s337_s28  ;;  %682 = vmatprep.subr.bf16.mxu0 %v781_v0  ;;  %v365_v4 = vpack.c.bf16 %v364_v3, %v364_v3  ;;  %v665_v5 = vld [vmem:[%s343_s29] ss:$0 sm:$0xff] }
  0x17   : > { %s664_s15 = sshll.u32 %s360_s14, 2 }
  0x18   : > { %s863_s18 = scalar_lea.vmem %s903_s6, %s664_s15 }
  0x19   : > { %683 = vmatpush3.bf16.msra.mxu0 %v740_v2 }
  0x1a   : > { %688 = vmatprep.subr.bf16.mxu0 (!%p669_p7), %v783_v12 }
  0x1c   : > { %685 = vmatmul.mubr.msk.bf16.vlgmr.msra.gmra.mrb[0].mxu0 %vm389_vm1, %v365_v4 }
  0x1d   : > { %690 = vmatprep.mubr.msk.bf16.mxu0 (!%p669_p7), %vm784_vm3, %v783_v12  ;;  %689 = vmatpush3.bf16.msra.mxu0 (!%p669_p7), %v445_v13 }
  0xec   : > { %436 = sbr.rel (%p669_p7) target bundleno = 465 (0x1d1), region = 48 }
  0xef   : > { %v427_v6 = vpop.f32.mrb[0].mxu0 }
  0xf0   : > { %v428_v7 = vadd.f32 %v665_v5, %v427_v6  ;;  %v686_v8 = vpop.f32.mrb[1].mxu0 }
  0xf1   : > { %v430_v9 = vpop.f32.mrb[2].mxu0 }
  0xf2   : > { %v687_v10 = vpop.f32.mrb[3].mxu0  ;;  %v437_v14 = vpack.c.bf16 (!%p669_p7), %v428_v7, %v428_v7  ;;  %v490_v17 = vmul.f32 (!%p669_p7), %v489_v15, %v428_v7 }
  0xf3   : > { %s488_s8 = scalar_select %p487_p8, 0.35355338, 1.0 }
  0xf4   : > { %691 = vmatmul.mubr.msk.bf16.vlgmr.msra.gmra.mrb[0].mxu0 %vm439_vm4, %v437_v14 }
  0xf5   : > { %v494_v21 = vstv %s488_s8 }
 0x1c7   : > { %v481_v18 = vpop.f32.mrb[0].mxu0 }
 0x1c8   : > { %v492_v19 = vmul.f32 %v491_v16, %v481_v18  ;;  %v692_v20 = vpop.f32.mrb[1].mxu0 }
 0x1c9   : > { %v484_v22 = vpop.f32.mrb[2].mxu0 }
 0x1ca   : > { %v493_v23 = vadd.f32 %v492_v19, %v490_v17  ;;  %v693_v24 = vpop.f32.mrb[3].mxu0 }
 0x1cc   : > { %v495_v25 = vmul.f32 %v494_v21, %v493_v23 }
 0x1ce   : > { %v496_v26 = vpack.c.bf16 %v495_v25, %v495_v25 }
 0x1d0   : > { %498 = vst.msk [vmem:[%s863_s18] sm:$0xf] %vm497_vm5, %v496_v26 }
 0x1d1 PF: > { %p671_p9 = scmp.lt.s32.totalorder %s763_s21, 8 }
 0x1d2   : > { %v503_v27 = vpack.c.bf16 (!%p671_p9), %v428_v7, %v428_v7  ;;  %vm504_vm6 = vcmask (!%p671_p9), 60416  }
 0x1d3   : > { %502 = sbr.rel (%p671_p9) target bundleno = 474 (0x1da), region = 52 }
 0x1d4   : > { %505 = vst.msk [vmem:[%s863_s18] sm:$0xf] (!%p671_p9), %vm504_vm6, %v503_v27 }
 0x1da PF: > { %s16_s25 = sadd.s32 1, %s779_s25   ;;  %s904_s21 = smov %s771_s23 }
 0x1db   : > { %p13_p10 = scmp.ge.s32.totalorder %s16_s25, 26   ;;  %s905_s22 = smov %s775_s24 }
 0x1dc   : > { %s906_s23 = smov %s909_s26  ;;  %s907_s24 = smov %s913_s27 }
 0x1dd   :  { %15 = sbr.rel (!%p13_p10) target bundleno = 3 (0x3), region = 94 }

</bundles_post_ra>
